<compile_context>
chip_gen: v6e
topology: v6e:2x2x1
jax: 0.10.0
libtpu: 0.0.40
codegen_flags: <defaults>
</compile_context>

<pallas_src>
import jax
import jax.numpy as jnp
from jax import lax
from jax.experimental import pallas as pl
from jax.experimental.pallas import tpu as pltpu


def _cdiv(a, b):
    return (a + b - 1) // b


def _round_up(n, m):
    return _cdiv(n, m) * m


# --------------------------------------------------------------------------- #
# Kernel
# --------------------------------------------------------------------------- #
def _mlp_kernel(x_ref, w1_ref, b1_ref, w2_ref, b2_ref, out_ref):
    """One batch tile.

    x_ref  : (tile_b, in_size) f32  -- native layout, contiguous HBM tile
    w1_ref : (hidden, in_size) f32  -- PyTorch layout, VMEM-resident
    b1_ref : (hidden, 1)       f32
    w2_ref : (hidden, 1)       f32  -- output weight as a column
    b2_ref : (1, 1)            f32
    out_ref: (2, tile_b)       f32  -- row 0 = logits^T, row 1 = probs^T
    """
    x = x_ref[...].astype(w1_ref.dtype)

    # Hidden layer on the MXU: hT[h, b] = sum_k W1[h, k] * x[b, k]
    hT = lax.dot_general(
        w1_ref[...], x,
        dimension_numbers=(((1,), (1,)), ((), ())),
        preferred_element_type=jnp.float32,
    )                                                     # (hidden, tile_b)
    hT = jnp.maximum(hT + b1_ref[...], 0.0)               # bias (lane bcast) + ReLU

    # Output layer (out_features == 1): VPU multiply + XLU sublane reduce.
    logitsT = jnp.sum(hT * w2_ref[...], axis=0, keepdims=True) + b2_ref[...]
    probsT = jax.nn.sigmoid(logitsT)                      # EUP exp + VPU

    # Single 2-sublane, lane-dense store (no per-row masked vst.msk).
    out_ref[...] = jnp.concatenate([logitsT, probsT], axis=0).astype(out_ref.dtype)


# --------------------------------------------------------------------------- #
# Tile-size selection (VMEM-derived; portable across v5e / v6e / v7x)
# --------------------------------------------------------------------------- #
def _tile_vmem_bytes(tile_b, in_size, hidden):
    x_buf = 2 * tile_b * in_size * 4              # double-buffered x tile (f32)
    out_buf = 2 * 2 * tile_b * 4                  # double-buffered (2, tile_b) output
    h_tmp = hidden * tile_b * 4                   # (hidden, tile_b) intermediate
    w_buf = 2 * 4 * (hidden * in_size + 2 * hidden + 1)   # resident weights/biases
    return x_buf + out_buf + h_tmp + w_buf


def _pick_tile_b(B, in_size, hidden, *, max_tile_b=8192,
                 vmem_budget=12 * 1024 * 1024):
    """Pick the batch tile.

    - Small batch: one tile covering all of B (block dims == array dims, so no
      (8,128) divisibility requirement).
    - Otherwise: lane-aligned (multiple of 128) tiles, at least 2 of them so
      v7x's two TensorCores both get work, capped by a conservative VMEM
      budget that fits every generation's default scoped VMEM limit.
    """
    if B <= 128:
        return B
    tile_b = min(_round_up(max_tile_b, 128), _round_up(_cdiv(B, 2), 128))
    while tile_b > 128 and _tile_vmem_bytes(tile_b, in_size, hidden) > vmem_budget:
        tile_b -= 128
    return tile_b


# --------------------------------------------------------------------------- #
# Parameters + wrapper
# --------------------------------------------------------------------------- #
def prepare_params(w_hidden, b_hidden, w_output, b_output, dtype=jnp.float32):
    """One-time conversion of PyTorch-layout parameters into the kernel layout."""
    hidden = w_hidden.shape[0]
    return {
        "w1": jnp.asarray(w_hidden, dtype=dtype),                          # (hidden, in_size)
        "b1": jnp.asarray(b_hidden, dtype=jnp.float32).reshape(hidden, 1), # (hidden, 1)
        "b2": jnp.asarray(b_output, dtype=jnp.float32).reshape(1, 1),      # (1, 1)
        "w2": jnp.asarray(w_output, dtype=jnp.float32).reshape(hidden, 1), # (hidden, 1) column
    }


def binary_classification_mlp(x, params, *, max_tile_b=8192):
    """Fused MLP forward.

    Args:
      x:      (B, in_size) float32, native PyTorch layout.
      params: dict from prepare_params().
    Returns:
      (probs, logits), each (B, 1) float32.
    """
    B, in_size = x.shape
    hidden = params["w1"].shape[0]
    assert params["w1"].shape == (hidden, in_size)

    tile_b = _pick_tile_b(B, in_size, hidden, max_tile_b=max_tile_b)
    # Partial boundary tile is fine (out-of-bound writes dropped); no jnp.pad
    # pass over x.
    n_tiles = _cdiv(B, tile_b)

    cost = pl.CostEstimate(
        flops=2 * B * in_size * hidden + 2 * B * hidden,
        transcendentals=B,                                   # sigmoid exp
        bytes_accessed=(B * in_size + hidden * in_size + 2 * hidden + 1 + 2 * B) * 4,
    )

    out = pl.pallas_call(
        _mlp_kernel,
        out_shape=jax.ShapeDtypeStruct((2, B), jnp.float32),   # row 0 logits, row 1 probs
        grid=(n_tiles,),
        in_specs=[
            pl.BlockSpec((tile_b, in_size), lambda i: (i, 0)),  # contiguous x tile, auto-pipelined
            pl.BlockSpec((hidden, in_size), lambda i: (0, 0)),  # weights/biases: VMEM-resident
            pl.BlockSpec((hidden, 1), lambda i: (0, 0)),
            pl.BlockSpec((hidden, 1), lambda i: (0, 0)),
            pl.BlockSpec((1, 1), lambda i: (0, 0)),
        ],
        out_specs=pl.BlockSpec((2, tile_b), lambda i: (0, i)),  # lane-dense output slab
        compiler_params=pltpu.CompilerParams(
            dimension_semantics=("parallel",),                  # independent tiles (megacore on v7x)
        ),
        cost_estimate=cost,
    )(x.astype(jnp.float32), params["w1"], params["b1"], params["w2"], params["b2"])

    logits = out[0, :].reshape(B, 1)
    probs = out[1, :].reshape(B, 1)
    return probs, logits


# --------------------------------------------------------------------------- #
# Demo / self-test
# --------------------------------------------------------------------------- #
def _init_linear_params(key, out_features, in_features):
    """Deterministic init mimicking torch.nn.Linear (uniform(-k, k), k=1/sqrt(fan_in))."""
    k = 1.0 / jnp.sqrt(jnp.float32(in_features))
    wkey, bkey = jax.random.split(key)
    w = jax.random.uniform(wkey, (out_features, in_features),
                           minval=-k, maxval=k, dtype=jnp.float32)
    b = jax.random.uniform(bkey, (out_features,),
                           minval=-k, maxval=k, dtype=jnp.float32)
    return w, b


if __name__ == "__main__":
    in_size, hidden_size = 16, 32

    root = jax.random.PRNGKey(0)
    k_x, k_h, k_o, k_x2 = jax.random.split(root, 4)

    w_hidden, b_hidden = _init_linear_params(k_h, hidden_size, in_size)
    w_output, b_output = _init_linear_params(k_o, 1, hidden_size)
    params = prepare_params(w_hidden, b_hidden, w_output, b_output)

    def reference(x):
        h = jnp.maximum(x @ w_hidden.T + b_hidden, 0.0)
        logits = h @ w_output.T + b_output
        return jax.nn.sigmoid(logits), logits

    # Test 1: small batch (single full-batch tile, block dims == array dims).
    x_small = jax.random.normal(k_x, (8, in_size), dtype=jnp.float32)
    probs, logits = binary_classification_mlp(x_small, params)
    jax.block_until_ready((probs, logits))
    assert probs.shape == (8, 1) and logits.shape == (8, 1)
    p_ref, l_ref = reference(x_small)
    assert jnp.allclose(logits, l_ref, atol=1e-4), "logits mismatch (small batch)"
    assert jnp.allclose(probs, p_ref, atol=1e-5), "probs mismatch (small batch)"

    # Test 2: exercises the multi-tile path with a partial boundary tile
    # (B=300 -> tile_b=256, grid=(2,), last tile has 44 valid columns).
    x_big = jax.random.normal(k_x2, (300, in_size), dtype=jnp.float32)
    probs2, logits2 = binary_classification_mlp(x_big, params)
    jax.block_until_ready((probs2, logits2))
    assert probs2.shape == (300, 1) and logits2.shape == (300, 1)
    p_ref2, l_ref2 = reference(x_big)
    assert jnp.allclose(logits2, l_ref2, atol=1e-4), "logits mismatch (tiled batch)"
    assert jnp.allclose(probs2, p_ref2, atol=1e-5), "probs mismatch (tiled batch)"

    print("KERNEL_OK")
</pallas_src>

<mosaic_0001>
module attributes {stable_mosaic.version = 11 : i64} {
  func.func @_mlp_kernel(%arg0: i32, %arg1: memref<8x16xf32, #tpu.memory_space<vmem>>, %arg2: memref<32x16xf32, #tpu.memory_space<vmem>>, %arg3: memref<32x1xf32, #tpu.memory_space<vmem>>, %arg4: memref<32x1xf32, #tpu.memory_space<vmem>>, %arg5: memref<1x1xf32, #tpu.memory_space<vmem>>, %arg6: memref<2x8xf32, #tpu.memory_space<vmem>>) attributes {dimension_semantics = [#tpu.dimension_semantics<parallel>], iteration_bounds = array<i64: 1>, scalar_prefetch = 0 : i64, scratch_operands = 0 : i64, tpu.core_type = #tpu.core_type<tc>, window_params = [{transform_indices = @transform_0, window_bounds = array<i64: 8, 16>}, {pipeline_mode = #tpu.pipeline_mode<synchronous>, transform_indices = @transform_1, window_bounds = array<i64: 32, 16>}, {pipeline_mode = #tpu.pipeline_mode<synchronous>, transform_indices = @transform_2, window_bounds = array<i64: 32, 1>}, {pipeline_mode = #tpu.pipeline_mode<synchronous>, transform_indices = @transform_3, window_bounds = array<i64: 32, 1>}, {pipeline_mode = #tpu.pipeline_mode<synchronous>, transform_indices = @transform_4, window_bounds = array<i64: 1, 1>}, {transform_indices = @transform_5, window_bounds = array<i64: 2, 8>}]} {
    %c0 = arith.constant 0 : index
    %c0_0 = arith.constant 0 : index
    %0 = vector.load %arg1[%c0, %c0_0] : memref<8x16xf32, #tpu.memory_space<vmem>>, vector<8x16xf32>
    %c0_1 = arith.constant 0 : index
    %c0_2 = arith.constant 0 : index
    %1 = vector.load %arg2[%c0_1, %c0_2] : memref<32x16xf32, #tpu.memory_space<vmem>>, vector<32x16xf32>
    %cst = arith.constant dense<0.000000e+00> : vector<32x8xf32>
    %2 = tpu.matmul %1, %0, %cst {dimension_numbers = #tpu.dot_dimension_numbers<[1], [1], [0], [0], [0, 0, 1, 0], [], []>} : vector<32x16xf32>, vector<8x16xf32>, vector<32x8xf32> -> vector<32x8xf32>
    %c0_3 = arith.constant 0 : index
    %c0_4 = arith.constant 0 : index
    %3 = vector.load %arg3[%c0_3, %c0_4] : memref<32x1xf32, #tpu.memory_space<vmem>>, vector<32x1xf32>
    %4 = vector.broadcast %3 : vector<32x1xf32> to vector<32x8xf32>
    %5 = arith.addf %2, %4 : vector<32x8xf32>
    %cst_5 = arith.constant 0.000000e+00 : f32
    %6 = vector.broadcast %cst_5 : f32 to vector<32x8xf32>
    %7 = arith.maximumf %5, %6 : vector<32x8xf32>
    %c0_6 = arith.constant 0 : index
    %c0_7 = arith.constant 0 : index
    %8 = vector.load %arg4[%c0_6, %c0_7] : memref<32x1xf32, #tpu.memory_space<vmem>>, vector<32x1xf32>
    %9 = vector.broadcast %8 : vector<32x1xf32> to vector<32x8xf32>
    %10 = arith.mulf %7, %9 : vector<32x8xf32>
    %cst_8 = arith.constant dense<0.000000e+00> : vector<8xf32>
    %11 = vector.multi_reduction <add>, %10, %cst_8 [0] : vector<32x8xf32> to vector<8xf32>
    %12 = vector.shape_cast %11 : vector<8xf32> to vector<1x8xf32>
    %c0_9 = arith.constant 0 : index
    %c0_10 = arith.constant 0 : index
    %13 = vector.load %arg5[%c0_9, %c0_10] : memref<1x1xf32, #tpu.memory_space<vmem>>, vector<1x1xf32>
    %14 = vector.broadcast %13 : vector<1x1xf32> to vector<1x8xf32>
    %15 = arith.addf %12, %14 : vector<1x8xf32>
    %16 = arith.negf %15 : vector<1x8xf32>
    %17 = math.exp %16 : vector<1x8xf32>
    %cst_11 = arith.constant 1.000000e+00 : f32
    %18 = vector.broadcast %cst_11 : f32 to vector<1x8xf32>
    %19 = arith.addf %18, %17 : vector<1x8xf32>
    %20 = arith.divf %18, %19 : vector<1x8xf32>
    %21 = tpu.concatenate %15, %20 in 0 : vector<1x8xf32>, vector<1x8xf32> -> vector<2x8xf32>
    %c0_12 = arith.constant 0 : index
    %c0_13 = arith.constant 0 : index
    %22 = vector.load %arg6[%c0_12, %c0_13] : memref<2x8xf32, #tpu.memory_space<vmem>>, vector<2x8xf32>
    tpu.vector_store %arg6[%c0_12, %c0_13], %21 {strides = array<i32>} : memref<2x8xf32, #tpu.memory_space<vmem>>, vector<2x8xf32>,
    return
  }
  func.func @transform_0(%arg0: i32) -> (i32, i32) {
    %c0_i32 = arith.constant 0 : i32
    %c0_i32_0 = arith.constant 0 : i32
    return %arg0, %c0_i32 : i32, i32
  }
  func.func @transform_1(%arg0: i32) -> (i32, i32) {
    %c0_i32 = arith.constant 0 : i32
    %c0_i32_0 = arith.constant 0 : i32
    %c0_i32_1 = arith.constant 0 : i32
    return %c0_i32, %c0_i32_0 : i32, i32
  }
  func.func @transform_2(%arg0: i32) -> (i32, i32) {
    %c0_i32 = arith.constant 0 : i32
    %c0_i32_0 = arith.constant 0 : i32
    %c0_i32_1 = arith.constant 0 : i32
    return %c0_i32, %c0_i32_0 : i32, i32
  }
  func.func @transform_3(%arg0: i32) -> (i32, i32) {
    %c0_i32 = arith.constant 0 : i32
    %c0_i32_0 = arith.constant 0 : i32
    %c0_i32_1 = arith.constant 0 : i32
    return %c0_i32, %c0_i32_0 : i32, i32
  }
  func.func @transform_4(%arg0: i32) -> (i32, i32) {
    %c0_i32 = arith.constant 0 : i32
    %c0_i32_0 = arith.constant 0 : i32
    %c0_i32_1 = arith.constant 0 : i32
    return %c0_i32, %c0_i32_0 : i32, i32
  }
  func.func @transform_5(%arg0: i32) -> (i32, i32) {
    %c0_i32 = arith.constant 0 : i32
    %c0_i32_0 = arith.constant 0 : i32
    return %c0_i32, %arg0 : i32, i32
  }
}

</mosaic_0001>

<bundles_post_ra>
// kernel: tpu_custom_call.1
= control target key start
LH: loop header
LB: loop body
LE: loop exit
PB: predicated region body
PF: predicated region fallthrough
CT: control target
= control target key end

     0   :  { %s370_s0 = inlined_call_operand.vmem [shape: f32[8,16], index: 0, kind: input, shape index: {}]   ;;  %s371_s1 = inlined_call_operand.vmem [shape: f32[32,16], index: 1, kind: input, shape index: {}]   ;;  %s372_s2 = inlined_call_operand.vmem [shape: f32[32,1], index: 2, kind: input, shape index: {}]   ;;  %s373_s3 = inlined_call_operand.vmem [shape: f32[32,1], index: 3, kind: input, shape index: {}]   ;;  %s374_s4 = inlined_call_operand.<no memory space> [shape: f32[1,1], index: 4, kind: input, shape index: {}]   ;;  %s375_s5 = inlined_call_operand.hbm [shape: f32[2,8], index: 5, kind: output, shape index: {}]  }
   0x1   :  { %v10_v0 = vstv %s374_s4 }
   0x2   :  { %11 = vst [vmem:[#allocation2] sm:$0x1] %v10_v0 }
   0x3   :  { %v23_v1 = vld [vmem:[%s370_s0] sm:$0xff]  ;;  %vm52_vm0 = vcmask 130048   ;;  %v26_v3 = vld [vmem:[%s371_s1 + $0x10] sm:$0xff]  ;;  %v25_v4 = vld [vmem:[%s371_s1 + $0x8] sm:$0xff]  ;;  %v285_v8 = vmov 0  }
   0x4   :  { %v24_v2 = vld [vmem:[%s371_s1] sm:$0xff]  ;;  %245 = vmatprep.subr.msk.mxu0 %vm52_vm0, %v23_v1  ;;  %253 = vmatprep.subr.msk.mxu1 %vm52_vm0, %v23_v1  ;;  %v27_v5 = vld [vmem:[%s371_s1 + $0x18] sm:$0xff]  ;;  %v30_v7 = vld [vmem:[%s372_s2 + $0x10] sm:$0xff] }
   0x5   :  { %246 = vmatpush3.xpose.msk.msra.mxu0 %vm52_vm0, %v23_v1  ;;  %254 = vmatpush3.xpose.msk.msra.mxu1 %vm52_vm0, %v23_v1  ;;  %v28_v6 = vld [vmem:[%s372_s2] sm:$0xff] }
   0x6   :  { %247 = vmatprep.mubr.msk.f32.mxu0 %vm52_vm0, %v24_v2  ;;  %250 = vmatprep.mubr.msk.f32.mxu1 %vm52_vm0, %v26_v3 }
   0x7   :  { %257 = vset.pattern.permute.xlu0 %v285_v8  ;;  %258 = vset.pattern.permute.xlu1 %v285_v8 }
   0x8   :  { %12 = vsyncpa [#allocation4], 0  ;;  %248 = vmatmul.mubr.msk.f32.vlgmr.msra.gmra.mxu0 %vm52_vm0, %v25_v4  ;;  %251 = vmatmul.mubr.msk.f32.vlgmr.msra.gmra.mxu1 %vm52_vm0, %v27_v5  ;;  %v29_v9 = vld [vmem:[%s372_s2 + $0x8] sm:$0xff]  ;;  %v31_v10 = vld [vmem:[%s372_s2 + $0x18] sm:$0xff]  ;;  %vm185_vm1 = vcmask 64512   ;;  %v205_v46 = vlaneseq  ;;  %s286_s2 = smov [#allocation3]  }
   0x9   :  { %34 = vperm.xlu0 %257, %v28_v6   ;;  %44 = vperm.xlu1 %258, %v30_v7   ;;  %v157_v11 = vld [vmem:[%s373_s3] sm:$0xff]  ;;  %v158_v12 = vld [vmem:[%s373_s3 + $0x8] sm:$0xff]  ;;  %v159_v13 = vld [vmem:[%s373_s3 + $0x10] sm:$0xff]  ;;  %vm216_vm2 = vcmask 1040384   ;;  %vm218_vm3 = vcmask 58368  }
   0xa   :  { %v160_v14 = vld [vmem:[%s373_s3 + $0x18] sm:$0xff]  ;;  %v199_v15 = vld [vmem:[#allocation2] sm:$0x1]  ;;  %v206_v49 = vshrl.u32 %v205_v46, 7  ;;  %s226_s3 = sshll.u32 %s286_s2, 4  ;;  %s227_s3 = int_to_ptr.vmem [resolvable:$true] %s226_s3 }
   0xb   :  { %s263_s18 = scalar_lea.vmem %s227_s3, 32  ;;  %p268_p1 = scmp.lt.s32.totalorder %s227_s3, %s227_s3 }
   0xc   :  { %v207_v52 = vsub.s32 0, %v206_v49  ;;  %p264_p0 = scmp.ne.s32.totalorder %s227_s3, %s263_s18  ;;  %p269_p2 = scmp.lt.s32.totalorder %s263_s18, %s263_s18 }
   0xd   :  { %39 = vperm.xlu0 %257, %v29_v9   ;;  %49 = vperm.xlu1 %258, %v31_v10  }
   0xe   :  { %p270_p3 = por %p269_p2, %p268_p1 }
  0x10   :  { %p271_p4 = pnand %p270_p3, %p264_p0 }
  0x11   :  { %163 = vperm.xlu0 %257, %v157_v11   ;;  %168 = vperm.xlu1 %258, %v158_v12  }
  0x15   :  { %173 = vperm.xlu0 %257, %v159_v13   ;;  %178 = vperm.xlu1 %258, %v160_v14  }
  0x19   :  { %202 = vperm.xlu0 %257, %v199_v15  }
  0x84   :  { %v35_v16 = vpop.permute.xlu0 %34  ;;  %v45_v17 = vpop.permute.xlu1 %44 }
  0x88   :  { %v40_v18 = vpop.permute.xlu0 %39  ;;  %v50_v19 = vpop.permute.xlu1 %49 }
  0x8c   :  { %v164_v20 = vpop.permute.xlu0 %163  ;;  %v169_v23 = vpop.permute.xlu1 %168 }
  0x90   :  { %v174_v35 = vpop.permute.xlu0 %173  ;;  %v179_v38 = vpop.permute.xlu1 %178 }
  0x94   :  { %v203_v54 = vpop.permute.xlu0 %202 }
  0x95   :  { %v208_v56 = vrot.slane %v203_v54, %v207_v52 }
  0xc8   :  { %v249_v21 = vpop.f32.mrf.mxu0  ;;  %v252_v22 = vpop.f32.mrf.mxu1 }
  0xc9   :  { %v140_v24 = vadd.f32 %v249_v21, %v40_v18  ;;  %v150_v25 = vadd.f32 %v252_v22, %v50_v19 }
  0xca   :  { %v134_v26 = vpop.f32.mrf.mxu0  ;;  %v144_v27 = vpop.f32.mrf.mxu1 }
  0xcb   :  { %v154_v28 = vmax.f32 %v140_v24, 0.0  ;;  %v135_v29 = vadd.f32 %v134_v26, %v35_v16  ;;  %v145_v30 = vadd.f32 %v144_v27, %v45_v17  ;;  %v156_v32 = vmax.f32 %v150_v25, 0.0 }
  0xcd   :  { %v182_v31 = vmul.f32 %v169_v23, %v154_v28  ;;  %v153_v33 = vmax.f32 %v135_v29, 0.0  ;;  %v155_v34 = vmax.f32 %v145_v30, 0.0  ;;  %v184_v40 = vmul.f32 %v179_v38, %v156_v32 }
  0xcf   :  { %v181_v36 = vmul.f32 %v164_v20, %v153_v33  ;;  %v183_v37 = vmul.f32 %v174_v35, %v155_v34  ;;  %v187_v39 = vsel %vm185_vm1, %v182_v31, 0.0  ;;  %v191_v45 = vsel %vm185_vm1, %v184_v40, 0.0 }
  0xd1   :  { %v186_v41 = vsel %vm185_vm1, %v181_v36, 0.0  ;;  %v189_v43 = vsel %vm185_vm1, %v183_v37, 0.0 }
  0xd2   :  { %v188_v42 = vadd.f32 %v187_v39, %v186_v41 }
  0xd4   :  { %v190_v44 = vadd.f32 %v189_v43, %v188_v42 }
  0xd6   :  { %v192_v47 = vadd.f32 %v191_v45, %v190_v44 }
  0xd8   :  { %v193_v48 = vrot.slane %v192_v47, 4 }
  0xda   :  { %v194_v50 = vadd.f32 %v193_v48, %v192_v47 }
  0xdc   :  { %v195_v51 = vrot.slane %v194_v50, 2 }
  0xde   :  { %v196_v53 = vadd.f32 %v195_v51, %v194_v50 }
  0xe0   :  { %v197_v55 = vrot.slane %v196_v53, 1 }
  0xe2   :  { %v198_v57 = vadd.f32 %v197_v55, %v196_v53 }
  0xe4   :  { %v209_v58 = vadd.f32 %v208_v56, %v198_v57 }
  0xe6   :  { %v239_v59 = vmul.f32 -1.442695, %v209_v58 }
  0xe8   :  { %259 = vpow2.f32 %v239_v59 }
  0xf5   :  { %v260_v60 = vpop.eup %259 }
  0xf6   :  { %v213_v61 = vadd.f32 1.0, %v260_v60 }
  0xf8   :  { %261 = vrcp.f32 %v213_v61 }
 0x105   :  { %v262_v62 = vpop.eup %261 }
 0x106   :  { %v217_v63 = vsel %vm216_vm2, %v209_v58, %v262_v62 }
 0x107   :  { %219 = vst.msk [vmem:[#allocation3] sm:$0x3] %vm218_vm3, %v217_v63 }
 0x108   :  { %274 = shalt.err (!%p271_p4)
}
 0x109   :  { %229 = dma.vmem_to_hbm [thread:$0]  %s227_s3, 32, %s375_s5, [#allocation4]  }
 0x10a   :  { %283 = dma.done.wait [#allocation4], 32  }
 0x10b   :  { %284 = vsyncadd [#allocation4], 4294967264 }
 0x10c   :  { %233 = vsyncpa [#allocation4], 1 }

</bundles_post_ra>
